<compile_context>
chip_gen: v5e
topology: v5e:2x2
jax: 0.10.0
libtpu: 0.0.40
codegen_flags: <defaults>
</compile_context>

<pallas_src>
import jax
import jax.numpy as jnp
from jax import lax
from jax.experimental import pallas as pl
from jax.experimental.pallas import tpu as pltpu

# ImageNet normalization constants (identical for every `family` branch).
IMAGENET_MEAN = (0.485, 0.456, 0.406)
IMAGENET_STD = (0.229, 0.224, 0.225)


def _round_up(x, m):
    return ((x + m - 1) // m) * m


def _pose_head_kernel(x_ref, wt_ref, out_ref):
    """Accumulating NT matmul over the flattened-image reduction axis.

    Grid: (p, k) = (core partition, reduction tile within partition).
    x_ref  : (B, TF)     f32 activation tile (normalization folded into w)
    wt_ref : (Kp, TF)    bf16 folded weight tile (transposed layout)
    out_ref: (1, B, Kp)  f32 partial result; its block index is constant over
                         k, so it stays VMEM-resident and is used directly as
                         the accumulator (no scratch).
    """
    k = pl.program_id(1)

    @pl.when(k == 0)
    def _():
        out_ref[...] = jnp.zeros_like(out_ref)

    x = x_ref[...]                              # (B, TF) f32
    w = wt_ref[...].astype(jnp.float32)         # (Kp, TF) upcast; hides under DMA
    # Contract the last dims of both operands: (B, TF) x (Kp, TF) -> (B, Kp).
    contrib = lax.dot_general(
        x, w,
        dimension_numbers=(((1,), (1,)), ((), ())),
        preferred_element_type=jnp.float32,
    )
    out_ref[0] += contrib


def prepare_pose_head(w, b, image_hw, *, tile_f=16384, num_parallel=1):
    """Fold ImageNet normalization into the linear pose head and lay the
    weight out for the kernel.  Run ONCE at init; reuse across forwards.

    w: (F, K) f32 pose-head weight (F = 3*H*W, NCHW flatten order)
    b: (K,)   f32 pose-head bias
    """
    H, W = image_hw
    F, K = w.shape
    assert F == 3 * H * W

    mean = jnp.asarray(IMAGENET_MEAN, jnp.float32)
    stdinv = 1.0 / jnp.asarray(IMAGENET_STD, jnp.float32)
    mean_flat = jnp.repeat(mean, H * W)        # (F,) channel-major, NCHW flatten
    stdinv_flat = jnp.repeat(stdinv, H * W)    # (F,)

    w_f32 = w.astype(jnp.float32)
    w_folded = w_f32 * stdinv_flat[:, None]                                # (F, K)
    b_folded = b.astype(jnp.float32) - (mean_flat * stdinv_flat) @ w_f32   # (K,)

    # K padded only to the bf16 sublane pack (16), NOT to 128 lanes: the
    # weight is transposed to (Kp, F) so F sits on the 128-lane axis.
    Kp = _round_up(K, 16)
    per_core = pl.cdiv(F, num_parallel)
    tf = min(tile_f, _round_up(per_core, 128))  # reduction tile, multiple of 128
    kt = pl.cdiv(per_core, tf)                  # reduction tiles per partition
    F_pad = num_parallel * kt * tf

    wt_pad = jnp.pad(w_folded.T, ((0, Kp - K), (0, F_pad - F))).astype(jnp.bfloat16)

    return dict(
        wt_pad=wt_pad, b_folded=b_folded,
        K=K, Kp=Kp, F=F, F_pad=F_pad, tf=tf, kt=kt, num_parallel=num_parallel,
    )


def coreml_wrapper_forward(image_nchw, head):
    """image_nchw: (B, 3, H, W) f32 in [0, 1]; returns (B, K) pose keypoints."""
    B, C, H, W = image_nchw.shape
    assert C == 3
    F, F_pad = head["F"], head["F_pad"]
    Kp, tf, kt = head["Kp"], head["tf"], head["kt"]
    num_parallel = head["num_parallel"]
    assert F == C * H * W

    x = image_nchw.reshape(B, F)
    x_pad = jnp.pad(x, ((0, 0), (0, F_pad - F)))   # stays f32 (tiny stream)

    cost = pl.CostEstimate(
        flops=2 * B * F_pad * Kp,
        transcendentals=0,
        bytes_accessed=Kp * F_pad * 2 + B * F_pad * 4 + num_parallel * B * Kp * 4,
    )

    partials = pl.pallas_call(
        _pose_head_kernel,
        out_shape=jax.ShapeDtypeStruct((num_parallel, B, Kp), jnp.float32),
        grid_spec=pltpu.PrefetchScalarGridSpec(
            num_scalar_prefetch=0,
            grid=(num_parallel, kt),
            in_specs=[
                pl.BlockSpec((B, tf), lambda p, k: (0, p * kt + k)),
                pl.BlockSpec((Kp, tf), lambda p, k: (0, p * kt + k)),
            ],
            out_specs=pl.BlockSpec((1, B, Kp), lambda p, k: (p, 0, 0)),
        ),
        compiler_params=pltpu.CompilerParams(
            dimension_semantics=("parallel", "arbitrary"),
            vmem_limit_bytes=32 * 1024 * 1024,
        ),
        cost_estimate=cost,
    )(x_pad, head["wt_pad"])

    # Combine (trivial) per-core partial sums, drop K padding, add bias.
    return partials.sum(axis=0)[:, :head["K"]] + head["b_folded"]


def _reference(image_nchw, w, b):
    mean = jnp.asarray(IMAGENET_MEAN, jnp.float32).reshape(1, 3, 1, 1)
    std = jnp.asarray(IMAGENET_STD, jnp.float32).reshape(1, 3, 1, 1)
    normalized = (image_nchw - mean) / std
    B = image_nchw.shape[0]
    return normalized.reshape(B, -1) @ w + b


if __name__ == "__main__":
    key = jax.random.PRNGKey(0)
    k_img, k_w, k_b = jax.random.split(key, 3)

    B, C, H, W = 2, 3, 16, 16          # small NCHW image in [0, 1]
    NUM_KEYPOINTS = 17
    K = NUM_KEYPOINTS * 2
    F = C * H * W

    image = jax.random.uniform(k_img, (B, C, H, W), dtype=jnp.float32)
    w = jax.random.normal(k_w, (F, K), dtype=jnp.float32) * 0.02
    b = jax.random.normal(k_b, (K,), dtype=jnp.float32) * 0.01

    # Weight folding / padding / bf16 cast happens ONCE here, not per forward.
    head = prepare_pose_head(w, b, (H, W), tile_f=16384, num_parallel=1)

    out = coreml_wrapper_forward(image, head)
    out = jax.block_until_ready(out)

    ref = _reference(image, w, b)
    assert out.shape == (B, K)
    # Weight stream is bf16 (f32 activations, f32 accumulation): small
    # rounding loss vs the pure-f32 reference.
    assert jnp.allclose(out, ref, atol=3e-2, rtol=3e-2), "mismatch vs reference"

    print("KERNEL_OK")
</pallas_src>

<mosaic_0001>
module attributes {stable_mosaic.version = 11 : i64} {
  func.func @_pose_head_kernel(%arg0: i32, %arg1: i32, %arg2: memref<2x768xf32, #tpu.memory_space<vmem>>, %arg3: memref<48x768xbf16, #tpu.memory_space<vmem>>, %arg4: memref<1x2x48xf32, #tpu.memory_space<vmem>>) attributes {dimension_semantics = [#tpu.dimension_semantics<parallel>, #tpu.dimension_semantics<arbitrary>], iteration_bounds = array<i64: 1, 1>, scalar_prefetch = 0 : i64, scratch_operands = 0 : i64, tpu.core_type = #tpu.core_type<tc>, window_params = [{transform_indices = @transform_0, window_bounds = array<i64: 2, 768>}, {transform_indices = @transform_1, window_bounds = array<i64: 48, 768>}, {transform_indices = @transform_2, window_bounds = array<i64: 1, 2, 48>}]} {
    %c0_i32 = arith.constant 0 : i32
    %0 = arith.cmpi eq, %arg1, %c0_i32 : i32
    %1 = arith.extui %0 : i1 to i32
    %c0_i32_0 = arith.constant 0 : i32
    %2 = arith.cmpi ne, %1, %c0_i32_0 : i32
    scf.if %2 {
      %cst_10 = arith.constant 0.000000e+00 : f32
      %13 = vector.broadcast %cst_10 : f32 to vector<1x2x48xf32>
      %c0_11 = arith.constant 0 : index
      %c0_12 = arith.constant 0 : index
      %c0_13 = arith.constant 0 : index
      %14 = vector.load %arg4[%c0_11, %c0_12, %c0_13] : memref<1x2x48xf32, #tpu.memory_space<vmem>>, vector<1x2x48xf32>
      tpu.vector_store %arg4[%c0_11, %c0_12, %c0_13], %13 {strides = array<i32>} : memref<1x2x48xf32, #tpu.memory_space<vmem>>, vector<1x2x48xf32>,
    } else {
    }
    %c0 = arith.constant 0 : index
    %c0_1 = arith.constant 0 : index
    %3 = vector.load %arg2[%c0, %c0_1] : memref<2x768xf32, #tpu.memory_space<vmem>>, vector<2x768xf32>
    %c0_2 = arith.constant 0 : index
    %c0_3 = arith.constant 0 : index
    %4 = vector.load %arg3[%c0_2, %c0_3] : memref<48x768xbf16, #tpu.memory_space<vmem>>, vector<48x768xbf16>
    %5 = arith.extf %4 : vector<48x768xbf16> to vector<48x768xf32>
    %cst = arith.constant dense<0.000000e+00> : vector<2x48xf32>
    %6 = tpu.matmul %3, %5, %cst {dimension_numbers = #tpu.dot_dimension_numbers<[1], [1], [0], [0], [0, 0, 1, 0], [], []>} : vector<2x768xf32>, vector<48x768xf32>, vector<2x48xf32> -> vector<2x48xf32>
    %c0_4 = arith.constant 0 : index
    %c0_5 = arith.constant 0 : index
    %c0_6 = arith.constant 0 : index
    %7 = vector.load %arg4[%c0_4, %c0_5, %c0_6] : memref<1x2x48xf32, #tpu.memory_space<vmem>>, vector<1x2x48xf32>
    %8 = vector.shape_cast %7 : vector<1x2x48xf32> to vector<2x48xf32>
    %9 = arith.addf %8, %6 : vector<2x48xf32>
    %c0_7 = arith.constant 0 : index
    %c0_8 = arith.constant 0 : index
    %c0_9 = arith.constant 0 : index
    %10 = vector.load %arg4[%c0_7, %c0_8, %c0_9] : memref<1x2x48xf32, #tpu.memory_space<vmem>>, vector<1x2x48xf32>
    %11 = vector.shape_cast %10 : vector<1x2x48xf32> to vector<2x48xf32>
    %12 = vector.shape_cast %9 : vector<2x48xf32> to vector<1x2x48xf32>
    tpu.vector_store %arg4[%c0_7, %c0_8, %c0_9], %12 {strides = array<i32>} : memref<1x2x48xf32, #tpu.memory_space<vmem>>, vector<1x2x48xf32>,
    return
  }
  func.func @transform_0(%arg0: i32, %arg1: i32) -> (i32, i32) {
    %c1_i32 = arith.constant 1 : i32
    %0 = arith.muli %arg0, %c1_i32 : i32
    %1 = arith.addi %0, %arg1 : i32
    %c0_i32 = arith.constant 0 : i32
    %c0_i32_0 = arith.constant 0 : i32
    return %c0_i32, %1 : i32, i32
  }
  func.func @transform_1(%arg0: i32, %arg1: i32) -> (i32, i32) {
    %c1_i32 = arith.constant 1 : i32
    %0 = arith.muli %arg0, %c1_i32 : i32
    %1 = arith.addi %0, %arg1 : i32
    %c0_i32 = arith.constant 0 : i32
    %c0_i32_0 = arith.constant 0 : i32
    return %c0_i32, %1 : i32, i32
  }
  func.func @transform_2(%arg0: i32, %arg1: i32) -> (i32, i32, i32) {
    %c0_i32 = arith.constant 0 : i32
    %c0_i32_0 = arith.constant 0 : i32
    %c0_i32_1 = arith.constant 0 : i32
    return %arg0, %c0_i32, %c0_i32_0 : i32, i32, i32
  }
}

</mosaic_0001>

<bundles_post_ra>
// kernel: tpu_custom_call.1
= control target key start
LH: loop header
LB: loop body
LE: loop exit
PB: predicated region body
PF: predicated region fallthrough
CT: control target
= control target key end

     0   :  { %7 = vsyncpa [#allocation3], 0  ;;  %s391_s0 = inlined_call_operand.hbm [shape: f32[2,768], index: 0, kind: input, shape index: {}]   ;;  %s392_s1 = inlined_call_operand.hbm [shape: bf16[48,768], index: 1, kind: input, shape index: {}]   ;;  %s393_s2 = inlined_call_operand.hbm [shape: f32[1,2,48], index: 2, kind: output, shape index: {}]  }
   0x1   :  { %8 = vsyncpa [#allocation6], 0 }
   0x2   :  { %9 = vsyncpa [#allocation4], 0  ;;  %s19_s11 = sshll.u32 %s391_s0, 4  ;;  %s359_s12 = smov [#allocation2]   ;;  %s20_s11 = int_to_ptr.hbm [resolvable:$true] %s19_s11 }
   0x3   :  { %s21_s13 = sshll.u32 %s359_s12, 4  ;;  %s33_s16 = sshll.u32 %s392_s1, 4  ;;  %s22_s13 = int_to_ptr.vmem [resolvable:$true] %s21_s13  ;;  %s34_s16 = int_to_ptr.hbm [resolvable:$true] %s33_s16 }
   0x4   :  { %24 = dma.hbm_to_vmem [thread:$0]  %s20_s11, 192, %s22_s13, [#allocation3]  }
   0x5   :  { %s360_s17 = smov [#allocation5]   ;;  %s361_s19 = smov 384  }
   0x6   :  { %s35_s18 = sshll.u32 %s360_s17, 4  ;;  %s362_s20 = smov 24   ;;  %s36_s18 = int_to_ptr.vmem [resolvable:$true] %s35_s18 }
   0x7   :  { %41 = dma.hbm_to_vmem [thread:$0]  %s34_s16, 2304, %s36_s18, [#allocation6], %s361_s19, %s361_s19, %s362_s20  }
   0x8   :  { %353 = dma.done.wait [#allocation3], 192  }
   0x9   :  { %354 = vsyncadd [#allocation3], 4294967104 }
   0xa   :  { %355 = dma.done.wait [#allocation6], 2304  }
   0xb   :  { %356 = vsyncadd [#allocation6], 4294964992  ;;  %v77_v0 = vld [vmem:[#allocation5 + $0x78] sm:$0xff]  ;;  %v74_v1 = vld [vmem:[#allocation5 + $0x60] sm:$0xff]  ;;  %vm58_vm0 = vcmask 386048   ;;  %v363_v62 = vmov 0.0  }
   0xc   :  { %v110_v2 = vunpack.c.l.bf16 %v77_v0  ;;  %v111_v3 = vunpack.c.h.bf16 %v77_v0  ;;  %v78_v4 = vld [vmem:[#allocation5 + $0x80] sm:$0xff]  ;;  %v75_v5 = vld [vmem:[#allocation5 + $0x68] sm:$0xff]  ;;  %v104_v8 = vunpack.c.l.bf16 %v74_v1  ;;  %v105_v9 = vunpack.c.h.bf16 %v74_v1  ;;  %v72_v13 = vld [vmem:[#allocation5 + $0x50] sm:$0xff]  ;;  %59 = vst.msk [vmem:[#allocation7] sm:$0x3] %vm58_vm0, %v363_v62  ;;  %s364_s0 = smov [#allocation7]  }
   0xd   :  { %v112_v6 = vunpack.c.l.bf16 %v78_v4  ;;  %v113_v7 = vunpack.c.h.bf16 %v78_v4  ;;  %v71_v10 = vld [vmem:[#allocation5 + $0x48] sm:$0xff]  ;;  %v106_v11 = vunpack.c.l.bf16 %v75_v5  ;;  %v107_v12 = vunpack.c.h.bf16 %v75_v5  ;;  %v60_v14 = vld [vmem:[#allocation2] sm:$0xff]  ;;  %v61_v15 = vld [vmem:[#allocation2 + $0x8] sm:$0xf]  ;;  %s262_s1 = sshll.u32 %s364_s0, 4  ;;  %s264_s23 = sshll.u32 %s393_s2, 4  ;;  %s263_s1 = int_to_ptr.vmem [resolvable:$true] %s262_s1  ;;  %s265_s23 = int_to_ptr.hbm [resolvable:$true] %s264_s23 }
   0xe   :  { %143 = vmatpush.xpose.msra.mxu0 %v110_v2  ;;  %163 = vmatpush.xpose.msra.mxu1 %v111_v3  ;;  %118 = vst [vmem:[#allocation1] ss:$4 sm:$0xff] %v60_v14  ;;  %v98_v16 = vunpack.c.l.bf16 %v71_v10  ;;  %v99_v17 = vunpack.c.h.bf16 %v71_v10  ;;  %v68_v18 = vld [vmem:[#allocation5 + $0x30] sm:$0xff]  ;;  %v100_v19 = vunpack.c.l.bf16 %v72_v13  ;;  %v101_v20 = vunpack.c.h.bf16 %v72_v13  ;;  %v69_v21 = vld [vmem:[#allocation5 + $0x38] sm:$0xff]  ;;  %v66_v27 = vld [vmem:[#allocation5 + $0x20] sm:$0xff] }
   0xf   :  { %183 = vmatpush.xpose.msra.mxu2 %v112_v6  ;;  %203 = vmatpush.xpose.msra.mxu3 %v113_v7  ;;  %120 = vst [vmem:[#allocation1 + $0x20] ss:$4 sm:$0xff] %v61_v15  ;;  %v92_v22 = vunpack.c.l.bf16 %v68_v18  ;;  %v93_v23 = vunpack.c.h.bf16 %v68_v18  ;;  %v65_v24 = vld [vmem:[#allocation5 + $0x18] sm:$0xff]  ;;  %v94_v25 = vunpack.c.l.bf16 %v69_v21  ;;  %v95_v26 = vunpack.c.h.bf16 %v69_v21  ;;  %v62_v30 = vld [vmem:[#allocation5] sm:$0xff]  ;;  %v79_v33 = vld [vmem:[#allocation5 + $0x88] sm:$0xff] }
  0x10   :  { %v86_v28 = vunpack.c.l.bf16 %v65_v24  ;;  %v87_v29 = vunpack.c.h.bf16 %v65_v24  ;;  %v88_v31 = vunpack.c.l.bf16 %v66_v27  ;;  %v89_v32 = vunpack.c.h.bf16 %v66_v27  ;;  %v63_v34 = vld [vmem:[#allocation5 + $0x8] sm:$0xff]  ;;  %v76_v39 = vld [vmem:[#allocation5 + $0x70] sm:$0xff]  ;;  %v73_v46 = vld [vmem:[#allocation5 + $0x58] sm:$0xff] }
  0x11   :  { %v80_v35 = vunpack.c.l.bf16 %v62_v30  ;;  %v81_v36 = vunpack.c.h.bf16 %v62_v30  ;;  %v114_v37 = vunpack.c.l.bf16 %v79_v33  ;;  %v115_v38 = vunpack.c.h.bf16 %v79_v33  ;;  %v70_v51 = vld [vmem:[#allocation5 + $0x40] sm:$0xff]  ;;  %v67_v54 = vld [vmem:[#allocation5 + $0x28] sm:$0xff]  ;;  %v64_v57 = vld [vmem:[#allocation5 + $0x10] sm:$0xff] }
  0x12   :  { %144 = vmatpush.xpose.msra.mxu0 %v104_v8  ;;  %164 = vmatpush.xpose.msra.mxu1 %v105_v9  ;;  %v82_v40 = vunpack.c.l.bf16 %v63_v34  ;;  %v83_v41 = vunpack.c.h.bf16 %v63_v34  ;;  %v108_v44 = vunpack.c.l.bf16 %v76_v39  ;;  %v109_v45 = vunpack.c.h.bf16 %v76_v39 }
  0x13   :  { %184 = vmatpush.xpose.msra.mxu2 %v106_v11  ;;  %204 = vmatpush.xpose.msra.mxu3 %v107_v12  ;;  %v102_v49 = vunpack.c.l.bf16 %v73_v46  ;;  %v103_v50 = vunpack.c.h.bf16 %v73_v46  ;;  %v96_v52 = vunpack.c.l.bf16 %v70_v51  ;;  %v97_v53 = vunpack.c.h.bf16 %v70_v51  ;;  %v253_v9 = vld [vmem:[#allocation7] sm:$0x3] }
  0x14   :  { %v90_v55 = vunpack.c.l.bf16 %v67_v54  ;;  %v91_v56 = vunpack.c.h.bf16 %v67_v54  ;;  %v84_v58 = vunpack.c.l.bf16 %v64_v57  ;;  %v85_v59 = vunpack.c.h.bf16 %v64_v57 }
  0x15   :  { %v121_v42 = vld.sshfl [vmem:[#allocation1] sm:$0xff pattern:$0x73625140]  ;;  %v122_v43 = vld.sshfl [vmem:[#allocation1 + $0x8] sm:$0xff pattern:$0x73625140] }
  0x16   :  { %145 = vmatpush.xpose.msra.mxu0 %v98_v16  ;;  %165 = vmatpush.xpose.msra.mxu1 %v99_v17  ;;  %v123_v47 = vld.sshfl [vmem:[#allocation1 + $0x10] sm:$0xff pattern:$0x73625140]  ;;  %v124_v48 = vld.sshfl [vmem:[#allocation1 + $0x18] sm:$0xff pattern:$0x73625140] }
  0x17   :  { %185 = vmatpush.xpose.msra.mxu2 %v100_v19  ;;  %205 = vmatpush.xpose.msra.mxu3 %v101_v20  ;;  %v125_v60 = vld.sshfl [vmem:[#allocation1 + $0x20] sm:$0xff pattern:$0x73625140]  ;;  %v126_v61 = vld.sshfl [vmem:[#allocation1 + $0x28] sm:$0xff pattern:$0x73625140] }
  0x1a   :  { %146 = vmatpush.xpose.msra.mxu0 %v92_v22  ;;  %166 = vmatpush.xpose.msra.mxu1 %v93_v23 }
  0x1b   :  { %186 = vmatpush.xpose.msra.mxu2 %v94_v25  ;;  %206 = vmatpush.xpose.msra.mxu3 %v95_v26 }
  0x1e   :  { %147 = vmatpush.xpose.msra.mxu0 %v86_v28  ;;  %167 = vmatpush.xpose.msra.mxu1 %v87_v29 }
  0x1f   :  { %187 = vmatpush.xpose.msra.mxu2 %v88_v31  ;;  %207 = vmatpush.xpose.msra.mxu3 %v89_v32 }
  0x22   :  { %148 = vmatpush.xpose.msra.mxu0 %v80_v35  ;;  %168 = vmatpush.xpose.msra.mxu1 %v81_v36 }
  0x23   :  { %188 = vmatpush.xpose.msra.mxu2 %v82_v40  ;;  %208 = vmatpush.xpose.msra.mxu3 %v83_v41 }
  0x25   :  { %149 = vmatmul.f32.vlgmr.msra.gmra.mxu0 %v121_v42  ;;  %169 = vmatmul.f32.vlgmr.msra.gmra.mxu1 %v122_v43 }
  0x26   :  { %223 = vmatpush.xpose.msrb.mxu0 %v114_v37  ;;  %243 = vmatpush.xpose.msrb.mxu1 %v115_v38 }
  0x27   :  { %189 = vmatmul.f32.vlgmr.msra.gmra.mxu2 %v123_v47  ;;  %209 = vmatmul.f32.vlgmr.msra.gmra.mxu3 %v124_v48 }
  0x2a   :  { %224 = vmatpush.xpose.msrb.mxu0 %v108_v44  ;;  %244 = vmatpush.xpose.msrb.mxu1 %v109_v45 }
  0x2e   :  { %225 = vmatpush.xpose.msrb.mxu0 %v102_v49  ;;  %245 = vmatpush.xpose.msrb.mxu1 %v103_v50 }
  0x32   :  { %226 = vmatpush.xpose.msrb.mxu0 %v96_v52  ;;  %246 = vmatpush.xpose.msrb.mxu1 %v97_v53 }
  0x36   :  { %227 = vmatpush.xpose.msrb.mxu0 %v90_v55  ;;  %247 = vmatpush.xpose.msrb.mxu1 %v91_v56 }
  0x3a   :  { %228 = vmatpush.xpose.msrb.mxu0 %v84_v58  ;;  %248 = vmatpush.xpose.msrb.mxu1 %v85_v59 }
  0x3d   :  { %229 = vmatmul.f32.vlgmr.msrb.gmra.mxu0 %v125_v60  ;;  %249 = vmatmul.f32.vlgmr.msrb.gmra.mxu1 %v126_v61 }
  0xa2   :  { %v150_v63 = vpop.f32.mrf.mxu0  ;;  %v170_v0 = vpop.f32.mrf.mxu1 }
  0xa3   :  { %v171_v1 = vadd.f32 %v170_v0, %v150_v63 }
  0xaa   :  { %v190_v2 = vpop.f32.mrf.mxu2  ;;  %v210_v4 = vpop.f32.mrf.mxu3 }
  0xab   :  { %v191_v3 = vadd.f32 %v190_v2, %v171_v1 }
  0xad   :  { %v211_v5 = vadd.f32 %v210_v4, %v191_v3 }
  0xba   :  { %v230_v6 = vpop.f32.mrf.mxu0  ;;  %v250_v7 = vpop.f32.mrf.mxu1 }
  0xbb   :  { %v231_v8 = vadd.f32 %v230_v6, %v211_v5 }
  0xbd   :  { %v251_v10 = vadd.f32 %v250_v7, %v231_v8 }
  0xbf   :  { %v254_v11 = vadd.f32 %v253_v9, %v251_v10 }
  0xc1   :  { %256 = vst.msk [vmem:[#allocation7] sm:$0x3] %vm58_vm0, %v254_v11 }
  0xc2   :  { %267 = dma.vmem_to_hbm [thread:$0]  %s263_s1, 32, %s265_s23, [#allocation4]  }
  0xc3   :  { %357 = dma.done.wait [#allocation4], 32  }
  0xc4   :  { %358 = vsyncadd [#allocation4], 4294967264 }
  0xc5   :  { %272 = vsyncpa [#allocation3], 1 }
  0xc6   :  { %273 = vsyncpa [#allocation6], 1 }
  0xc7   :  { %274 = vsyncpa [#allocation4], 1 }

</bundles_post_ra>
